<compile_context>
chip_gen: v7x
topology: tpu7x:2x2x1
jax: 0.10.0
libtpu: 0.0.40
codegen_flags: <defaults>
</compile_context>

<pallas_src>
import functools

import numpy as np
import jax
import jax.numpy as jnp
from jax.experimental import pallas as pl
from jax.experimental.pallas import tpu as pltpu

# ----------------------- problem configuration --------------------------------
C = 8                                         # points per direction (c = 8 in the notebook)
NS = (C, C)                                   # Ns
BASES = ("chebyshev", "fourier")              # bases
DOMAINS = ((0.0, 1.0), (0.0, 2.0 * np.pi))    # (t domain, x domain)
EPS = 1e-14                                   # same eps as the PyTorch module

D0_LO, D0_HI = DOMAINS[0]
D1_LO, D1_HI = DOMAINS[1]
D0_LEN = D0_HI - D0_LO
D1_LEN = D1_HI - D1_LO

TM_MAX = 1024                 # max tile along M0 (eval-t axis), multiple of 8
TN_MAX = 4096                 # max tile along M1 (eval-x axis), lane-dense multiple of 128
MAX_TILE_ELEMS = 2 * 1024 * 1024   # cap tm*tn (f32) so 2x-buffered output fits v7x VMEM


def _pick_tile(dim, max_tile, quantum):
    """Largest tile <= max_tile that is a multiple of `quantum` and divides `dim`;
    fall back to the full dim (full-extent blocks are always legal)."""
    t = min(max_tile, dim)
    t = (t // quantum) * quantum
    while t >= quantum:
        if dim % t == 0:
            return t
        t -= quantum
    return dim


def _vmem_budget_bytes(tm, tn, n0):
    """Footprint-derived VMEM budget (double-buffered in/out tiles + headroom)."""
    n0_sub = ((max(n0, 1) + 7) // 8) * 8           # sublane padding for W's leading dim
    tn_lane = ((tn + 127) // 128) * 128            # lane padding
    out_b = 2 * tm * tn_lane * 4                   # double-buffered output tile
    r_b = 2 * tm * 128 * 4                         # r tile: n0 lanes pad to 128
    w_b = 2 * n0_sub * tn_lane * 4                 # W tile
    total = out_b + r_b + w_b
    # margin for compiler scratch; keep under v7x's 64 MiB physical VMEM
    return int(min(48 * 1024 * 1024, max(8 * 1024 * 1024, total * 2)))


# ----------------------------- Pallas kernel ----------------------------------
def _spectral_interp_kernel(r_ref, w_ref, out_ref):
    # r_ref   : (TM, N0)  normalised chebyshev barycentric weights (denominator folded in)
    # w_ref   : (N0, TN)  W = values @ F  (fourier eval + 1/N1 folded in)
    # out_ref : (TM, TN)  lane-dense output tile
    out_ref[...] = jnp.dot(r_ref[...], w_ref[...],
                           preferred_element_type=jnp.float32)


# ------------------------------ wrapper ----------------------------------------
@functools.partial(jax.jit)
def spectral_interp_forward(values, x_eval_t, x_eval_x, nodes0, w0, k1):
    """Forward pass of SpectralInterpolationND([C, C], ['chebyshev','fourier'], DOMAINS)."""
    values = values.astype(jnp.float32)
    n0, n1 = values.shape
    m0 = x_eval_t.shape[0]
    m1 = x_eval_x.shape[0]

    # ---- values-independent precompute (plain XLA, under the same jit) ----
    # Chebyshev barycentric ratio matrix, with the denominator folded in (exact division).
    x0s = 2.0 * (x_eval_t.astype(jnp.float32) - D0_LO) / D0_LEN - 1.0
    dx = x0s[:, None] - nodes0.astype(jnp.float32)[None, :]
    s = jnp.sign(dx)
    s = jnp.where(s == 0.0, 1.0, s)        # guard exact node hits
    dx = s * jnp.maximum(jnp.abs(dx), EPS)
    r = w0.astype(jnp.float32)[None, :] / dx                       # (M0, N0)
    r_norm = r / jnp.sum(r, axis=-1, keepdims=True)                # (M0, N0)

    # Combined fourier matrix F (N1, M1) = real(DFT @ exp(i*k*x1_std)) / N1.
    mm = jnp.arange(n1, dtype=jnp.float32)
    ang = (-2.0 * np.pi / n1) * jnp.outer(mm, mm)                  # (N1, N1) DFT angles
    x1s = 2.0 * np.pi * (x_eval_x.astype(jnp.float32) - D1_LO) / D1_LEN
    theta = jnp.outer(k1.astype(jnp.float32), x1s)                 # (N1, M1)
    fmat = (jnp.cos(ang) @ jnp.cos(theta)
            - jnp.sin(ang) @ jnp.sin(theta)) / float(n1)           # (N1, M1)

    # Fuse the second matmul into the precompute: W = values @ F  (tiny (8,8)@(8,M1)).
    wmat = values @ fmat                                           # (N0, M1)

    # ---- tiling / grid ----
    tm = _pick_tile(m0, TM_MAX, 8)
    # Keep >=2 tiles along m1 when possible (both v7x TensorCores busy), and cap the
    # output tile element count so double-buffering fits v7x's 64 MiB VMEM.
    tn_cap = TN_MAX
    if m1 >= 256:
        tn_cap = min(tn_cap, m1 // 2)
    tn_cap = min(tn_cap, max(128, (MAX_TILE_ELEMS // max(tm, 1)) // 128 * 128))
    tn = _pick_tile(m1, tn_cap, 128)
    grid = (m0 // tm, m1 // tn)

    return pl.pallas_call(
        _spectral_interp_kernel,
        out_shape=jax.ShapeDtypeStruct((m0, m1), jnp.float32),
        grid_spec=pltpu.PrefetchScalarGridSpec(
            num_scalar_prefetch=0,
            grid=grid,
            in_specs=[
                pl.BlockSpec((tm, n0), lambda i, j: (i, 0)),        # r_norm tile
                pl.BlockSpec((n0, tn), lambda i, j: (0, j)),        # W tile
            ],
            out_specs=pl.BlockSpec((tm, tn), lambda i, j: (i, j)),  # lane-dense output
        ),
        compiler_params=pltpu.CompilerParams(
            dimension_semantics=("parallel", "parallel"),           # no reduction axis
            vmem_limit_bytes=_vmem_budget_bytes(tm, tn, n0),
        ),
    )(r_norm, wmat)


# --------------------------- pure-JAX reference --------------------------------
def reference_forward(values, x_eval_t, x_eval_x, nodes0, w0, k1):
    # chebyshev barycentric along dim 0
    xs = 2.0 * (x_eval_t - D0_LO) / D0_LEN - 1.0
    dx = xs[:, None] - nodes0[None, :]
    s = jnp.sign(dx)
    s = jnp.where(s == 0.0, 1.0, s)
    dx = s * jnp.maximum(jnp.abs(dx), EPS)
    r = w0[None, :] / dx
    g = (r @ values) / jnp.sum(r, axis=-1, keepdims=True)          # (M0, N1)
    # fourier along dim 1 via fft + complex evaluation
    n1 = values.shape[1]
    coeffs = jnp.fft.fft(g, axis=-1)                               # (M0, N1) complex
    xs1 = 2.0 * np.pi * (x_eval_x - D1_LO) / D1_LEN
    fmat = jnp.exp(1j * xs1[:, None] * k1[None, :])                # (M1, N1)
    return jnp.real(coeffs @ fmat.T) / n1                          # (M0, M1)


# --------------------------------- main ----------------------------------------
if __name__ == "__main__":
    key = jax.random.PRNGKey(0)

    n0, n1 = NS
    # --- module constants (exactly as __init__ builds them) ---
    i_lin = np.linspace(0.0, 1.0, n0)
    nodes0 = np.cos(np.pi * i_lin).astype(np.float32)              # standard cheb nodes
    w0 = np.ones(n0, dtype=np.float32)
    w0[0] *= 0.5
    w0[-1] *= 0.5
    w0[1::2] = -1.0                                                # same assignment order as module
    k1 = (np.fft.fftfreq(n1) * n1).astype(np.float32)              # fourier frequencies

    # nn.Parameter values: deterministic non-trivial init (module itself uses zeros)
    values = jax.random.normal(key, (n0, n1), dtype=jnp.float32)

    # --- evaluation points: small, lane-dense along the fourier axis ---
    m0, m1 = 64, 1024
    x_eval_t = jnp.linspace(0.03, 0.97, m0, dtype=jnp.float32)                    # in DOMAINS[0]
    x_eval_x = jnp.linspace(0.0, 2.0 * np.pi, m1 + 1, dtype=jnp.float32)[:-1]     # in DOMAINS[1]

    out = spectral_interp_forward(values, x_eval_t, x_eval_x,
                                  jnp.asarray(nodes0), jnp.asarray(w0), jnp.asarray(k1))
    out = jax.block_until_ready(out)

    ref = reference_forward(values, x_eval_t, x_eval_x,
                            jnp.asarray(nodes0), jnp.asarray(w0), jnp.asarray(k1))
    ref = jax.block_until_ready(ref)

    assert out.shape == (m0, m1), out.shape
    np.testing.assert_allclose(np.asarray(out), np.asarray(ref), rtol=2e-4, atol=2e-4)
    print("KERNEL_OK")
</pallas_src>

<mosaic_0001>
module attributes {stable_mosaic.version = 11 : i64} {
  func.func @_spectral_interp_kernel(%arg0: i32, %arg1: i32, %arg2: memref<64x8xf32, #tpu.memory_space<vmem>>, %arg3: memref<8x512xf32, #tpu.memory_space<vmem>>, %arg4: memref<64x512xf32, #tpu.memory_space<vmem>>) attributes {dimension_semantics = [#tpu.dimension_semantics<parallel>, #tpu.dimension_semantics<parallel>], iteration_bounds = array<i64: 1, 2>, scalar_prefetch = 0 : i64, scratch_operands = 0 : i64, tpu.core_type = #tpu.core_type<tc>, window_params = [{transform_indices = @transform_0, window_bounds = array<i64: 64, 8>}, {transform_indices = @transform_1, window_bounds = array<i64: 8, 512>}, {transform_indices = @transform_2, window_bounds = array<i64: 64, 512>}]} {
    %c0 = arith.constant 0 : index
    %c0_0 = arith.constant 0 : index
    %0 = vector.load %arg2[%c0, %c0_0] : memref<64x8xf32, #tpu.memory_space<vmem>>, vector<64x8xf32>
    %c0_1 = arith.constant 0 : index
    %c0_2 = arith.constant 0 : index
    %1 = vector.load %arg3[%c0_1, %c0_2] : memref<8x512xf32, #tpu.memory_space<vmem>>, vector<8x512xf32>
    %cst = arith.constant dense<0.000000e+00> : vector<64x512xf32>
    %2 = tpu.matmul %0, %1, %cst {dimension_numbers = #tpu.dot_dimension_numbers<[1], [0], [0], [1], [0, 0, 1, 1], [], []>} : vector<64x8xf32>, vector<8x512xf32>, vector<64x512xf32> -> vector<64x512xf32>
    %c0_3 = arith.constant 0 : index
    %c0_4 = arith.constant 0 : index
    %3 = vector.load %arg4[%c0_3, %c0_4] : memref<64x512xf32, #tpu.memory_space<vmem>>, vector<64x512xf32>
    tpu.vector_store %arg4[%c0_3, %c0_4], %2 {strides = array<i32>} : memref<64x512xf32, #tpu.memory_space<vmem>>, vector<64x512xf32>,
    return
  }
  func.func @transform_0(%arg0: i32, %arg1: i32) -> (i32, i32) {
    %c0_i32 = arith.constant 0 : i32
    %c0_i32_0 = arith.constant 0 : i32
    return %arg0, %c0_i32 : i32, i32
  }
  func.func @transform_1(%arg0: i32, %arg1: i32) -> (i32, i32) {
    %c0_i32 = arith.constant 0 : i32
    %c0_i32_0 = arith.constant 0 : i32
    return %c0_i32, %arg1 : i32, i32
  }
  func.func @transform_2(%arg0: i32, %arg1: i32) -> (i32, i32) {
    %c0_i32 = arith.constant 0 : i32
    return %arg0, %arg1 : i32, i32
  }
}

</mosaic_0001>

<bundles_post_ra>
// kernel: spectral_interp_forward.1
= control target key start
LH: loop header
LB: loop body
LE: loop exit
PB: predicated region body
PF: predicated region fallthrough
CT: control target
= control target key end

     0   :  { %7 = vsyncpa [#allocation3], 0  ;;  %s965_s0 = inlined_call_operand.vmem [shape: f32[64,8], index: 0, kind: input, shape index: {}]   ;;  %s966_s1 = inlined_call_operand.vmem [shape: f32[8,1024], index: 1, kind: input, shape index: {}]   ;;  %s967_s2 = inlined_call_operand.hbm [shape: f32[64,1024], index: 2, kind: output, shape index: {}]  }
   0x1   :  { %9 = vsyncpa [#allocation3 + $0x1], 0  ;;  %s772_s9 = smov 0   ;;  %s774_s10 = smov 0  }
   0x2   :  { %s776_s11 = smov 0   ;;  %s778_s12 = smov 0  }
   0x3   :  { %s780_s13 = smov 0   ;;  %s782_s14 = smov 0  }
   0x4 LB: > { %s582_s15 = sadd.s32 4294967295, %s750_s14   ;;  %s583_s16 = sadd.s32 4294967294, %s750_s14   ;;  %s750_s14 = sphi %s782_s14, %s15_s14   ;;  %s746_s13 = sphi %s780_s13, %s974_s13   ;;  %s742_s12 = sphi %s778_s12, %s973_s12   ;;  %s738_s11 = sphi %s776_s11, %s972_s11   ;;  %s734_s10 = sphi %s774_s10, %s971_s10   ;;  %s730_s9 = sphi %s772_s9, %s970_s9  }
   0x5   : > { %s24_s17 = sadd.s32 1, %s746_s13  ;;  %s88_s18 = sadd.s32 1, %s738_s11 }
   0x6   : > { %p25_p0 = scmp.ge.s32.totalorder %s24_s17, 2  ;;  %p98_p1 = scmp.ne.s32.totalorder %s738_s11, %s734_s10 }
   0x7   : > { %p99_p2 = scmp.eq.s32.totalorder %s582_s15, 1  ;;  %p104_p3 = scmp.ne.s32.totalorder %s734_s10, %s730_s9 }
   0x8   : > { %s976_s17 = smov (%p25_p0, %s24_s17), 0  ;;  %p105_p5 = scmp.eq.s32.totalorder %s583_s16, 1 }
   0x9   : > { %p812_p4 = por %p99_p2, %p98_p1  ;;  %s84_s20 = ssub.s32 %s746_s13, %s976_s17 }
   0xa   : > { %p587_p6 = scmp.ge.s32.totalorder %s750_s14, 1  ;;  %p86_p7 = scmp.eq.s32.totalorder %s84_s20, 0 }
   0xb   : > { %p819_p8 = por %p105_p5, %p104_p3  ;;  %p141_p9 = scmp.lt.s32.totalorder %s750_s14, 3 }
   0xc   : > { %s825_s22 = scalar_select %p86_p7, %s738_s11, %s88_s18  }
   0xd   : > { %p142_p10 = pnand %p587_p6, %p141_p9 }
   0xe   : > { %s589_s23 = sshll.u32 (!%p142_p10), %s742_s12, 2  ;;  %v752_v0 = vmov (!%p142_p10), 0.0   ;;  %v182_v1 = vld [vmem:[%s965_s0] sm:$0xff] (!%p142_p10)  ;;  %vm194_vm0 = vcmask (!%p142_p10), 64512   ;;  %v183_v6 = vld [vmem:[%s965_s0 + $0x8] sm:$0xff] (!%p142_p10)  ;;  %v184_v7 = vld [vmem:[%s965_s0 + $0x10] sm:$0xff] (!%p142_p10) }
   0xf   : > { %145 = sbr.rel (%p142_p10) target bundleno = 285 (0x11d), region = 28  ;;  %p175_p11 = scmp.lt.s32.totalorder (!%p142_p10), %s589_s23, 7  ;;  %283 = vmatprep.mubr.f32.mxu0 (!%p142_p10), %v752_v0  ;;  %396 = vmatprep.mubr.f32.mxu1 (!%p142_p10), %v752_v0  ;;  %v185_v8 = vld [vmem:[%s965_s0 + $0x18] sm:$0xff] (!%p142_p10)  ;;  %v186_v9 = vld [vmem:[%s965_s0 + $0x20] sm:$0xff] (!%p142_p10)  ;;  %v187_v10 = vld [vmem:[%s965_s0 + $0x28] sm:$0xff] (!%p142_p10) }
  0x10   : > { %v188_v11 = vld [vmem:[%s965_s0 + $0x30] sm:$0xff] (!%p142_p10)  ;;  %v189_v12 = vld [vmem:[%s965_s0 + $0x38] sm:$0xff] (!%p142_p10)  ;;  %s165_s26 = sand.u32 (!%p142_p10), 1, %s734_s10   ;;  %s612_s29 = sshll.u32 (!%p142_p10), %s742_s12, 9 }
  0x11   : > { %s909_s5 = scalar_lea.hbm (!%p142_p10), %s967_s2, %s612_s29  ;;  %s919_s12 = scalar_lea.sflag (!%p142_p10), [#allocation3], %s165_s26 }
  0x12   : > { %s753_s7 = smov (!%p142_p10), [#allocation2]  }
  0x13   : > { %s676_s8 = sshll.u32 (!%p142_p10), %s753_s7, 4  ;;  %s677_s8 = int_to_ptr.vmem [resolvable:$false] %s676_s8 }
  0x14   : > { %s678_s15 = scalar_lea.vmem (!%p142_p10), %s677_s8, 8192 }
  0x16   : > { %s978_s23 = smov (!%p175_p11, %s589_s23), 7 }
  0x17   : > { %s590_s24 = sshll.u32 %s978_s23, 3 }
  0x18   : > { %s178_s27 = scalar_lea.vmem %s966_s1, %s590_s24 }
  0x19   : > { %v191_v2 = vld [vmem:[%s178_s27 + $0x8] sm:$0xff]  ;;  %v193_v3 = vld [vmem:[%s178_s27 + $0x18] sm:$0xff]  ;;  %v190_v4 = vld [vmem:[%s178_s27] sm:$0xff] }
  0x1a   : > { %219 = vmatprep.subr.mxu0 %v191_v2  ;;  %332 = vmatprep.subr.mxu1 %v193_v3  ;;  %v192_v5 = vld [vmem:[%s178_s27 + $0x10] sm:$0xff]  ;;  %s588_s27 = sshll.u32 %s165_s26, 8 }
  0x1b   : > { %220 = vmatpush1.msra.mxu0 %v190_v4  ;;  %333 = vmatpush1.msra.mxu1 %v192_v5  ;;  %s874_s28 = scalar_lea.vmem [#allocation2], %s588_s27 }
  0x1c   : > { %591 = vmatmul.mubr.msk.f32.vlgmr.msra.gmra.mrb[0].mxu0 %vm194_vm0, %v182_v1  ;;  %599 = vmatmul.mubr.msk.f32.vlgmr.msra.gmra.mrb[0].mxu1 %vm194_vm0, %v182_v1  ;;  %s494_s30 = sshll.u32 %s874_s28, 4  ;;  %s911_s30 = int_to_ptr.vmem [resolvable:$true] %s494_s30 }
  0x1d   : > { %289 = vmatprep.mubr.f32.mxu0 %v752_v0  ;;  %402 = vmatprep.mubr.f32.mxu1 %v752_v0  ;;  %s672_s6 = scalar_lea.vmem %s911_s30, 4096  ;;  %p679_p1 = scmp.lt.s32.totalorder %s911_s30, %s677_s8 }
  0x1e   : > { %p673_p12 = scmp.ne.s32.totalorder %s911_s30, %s672_s6  ;;  %p680_p2 = scmp.lt.s32.totalorder %s678_s15, %s672_s6 }
  0x20   : > { %592 = vmatmul.mubr.msk.f32.gmra.mrb[2].mxu0 %vm194_vm0, %v183_v6  ;;  %600 = vmatmul.mubr.msk.f32.gmra.mrb[2].mxu1 %vm194_vm0, %v183_v6  ;;  %p674_p13 = pnand %p673_p12, %p812_p4  ;;  %p681_p3 = por %p680_p2, %p679_p1 }
  0x21   : > { %295 = vmatprep.mubr.f32.mxu0 %v752_v0  ;;  %408 = vmatprep.mubr.f32.mxu1 %v752_v0 }
  0x22   : > { %p675_p0 = pneg %p674_p13 }
  0x24   : > { %593 = vmatmul.mubr.msk.f32.gmra.mrb[4].mxu0 %vm194_vm0, %v184_v7  ;;  %601 = vmatmul.mubr.msk.f32.gmra.mrb[4].mxu1 %vm194_vm0, %v184_v7  ;;  %p682_p5 = pnand %p681_p3, %p675_p0 }
  0x25   : > { %301 = vmatprep.mubr.f32.mxu0 %v752_v0  ;;  %414 = vmatprep.mubr.f32.mxu1 %v752_v0 }
  0x28   : > { %594 = vmatmul.mubr.msk.f32.gmra.mrb[6].mxu0 %vm194_vm0, %v185_v8  ;;  %602 = vmatmul.mubr.msk.f32.gmra.mrb[6].mxu1 %vm194_vm0, %v185_v8 }
  0x29   : > { %307 = vmatprep.mubr.f32.mxu0 %v752_v0  ;;  %420 = vmatprep.mubr.f32.mxu1 %v752_v0 }
  0x2c   : > { %595 = vmatmul.mubr.msk.f32.gmra.mrb[8].mxu0 %vm194_vm0, %v186_v9  ;;  %603 = vmatmul.mubr.msk.f32.gmra.mrb[8].mxu1 %vm194_vm0, %v186_v9 }
  0x2d   : > { %313 = vmatprep.mubr.f32.mxu0 %v752_v0  ;;  %426 = vmatprep.mubr.f32.mxu1 %v752_v0 }
  0x30   : > { %596 = vmatmul.mubr.msk.f32.gmra.mrb[10].mxu0 %vm194_vm0, %v187_v10  ;;  %604 = vmatmul.mubr.msk.f32.gmra.mrb[10].mxu1 %vm194_vm0, %v187_v10 }
  0x31   : > { %319 = vmatprep.mubr.f32.mxu0 %v752_v0  ;;  %432 = vmatprep.mubr.f32.mxu1 %v752_v0 }
  0x34   : > { %597 = vmatmul.mubr.msk.f32.gmra.mrb[12].mxu0 %vm194_vm0, %v188_v11  ;;  %605 = vmatmul.mubr.msk.f32.gmra.mrb[12].mxu1 %vm194_vm0, %v188_v11 }
  0x35   : > { %325 = vmatprep.mubr.f32.mxu0 %v752_v0  ;;  %438 = vmatprep.mubr.f32.mxu1 %v752_v0 }
  0x38   : > { %598 = vmatmul.mubr.msk.f32.gmra.mrb[14].mxu0 %vm194_vm0, %v189_v12  ;;  %606 = vmatmul.mubr.msk.f32.gmra.mrb[14].mxu1 %vm194_vm0, %v189_v12 }
  0xef   : > { %v285_v13 = vpop.f32.mrb[0].mxu0  ;;  %v398_v14 = vpop.f32.mrb[0].mxu1 }
  0xf0   : > { %445 = vst [vmem:[%s874_s28] sm:$0xff] %v285_v13  ;;  %447 = vst [vmem:[%s874_s28 + $0x10] sm:$0xff] %v398_v14  ;;  %v287_v15 = vpop.f32.mrb[1].mxu0  ;;  %v400_v16 = vpop.f32.mrb[1].mxu1 }
  0xf1   : > { %446 = vst [vmem:[%s874_s28 + $0x8] sm:$0xff] %v287_v15  ;;  %448 = vst [vmem:[%s874_s28 + $0x18] sm:$0xff] %v400_v16 }
  0xf3   : > { %v291_v17 = vpop.f32.mrb[2].mxu0  ;;  %v404_v18 = vpop.f32.mrb[2].mxu1 }
  0xf4   : > { %449 = vst [vmem:[%s874_s28 + $0x20] sm:$0xff] %v291_v17  ;;  %451 = vst [vmem:[%s874_s28 + $0x30] sm:$0xff] %v404_v18  ;;  %v293_v19 = vpop.f32.mrb[3].mxu0  ;;  %v406_v20 = vpop.f32.mrb[3].mxu1 }
  0xf5   : > { %450 = vst [vmem:[%s874_s28 + $0x28] sm:$0xff] %v293_v19  ;;  %452 = vst [vmem:[%s874_s28 + $0x38] sm:$0xff] %v406_v20 }
  0xf7   : > { %v297_v21 = vpop.f32.mrb[4].mxu0  ;;  %v410_v22 = vpop.f32.mrb[4].mxu1 }
  0xf8   : > { %453 = vst [vmem:[%s874_s28 + $0x40] sm:$0xff] %v297_v21  ;;  %455 = vst [vmem:[%s874_s28 + $0x50] sm:$0xff] %v410_v22  ;;  %v299_v23 = vpop.f32.mrb[5].mxu0  ;;  %v412_v24 = vpop.f32.mrb[5].mxu1 }
  0xf9   : > { %454 = vst [vmem:[%s874_s28 + $0x48] sm:$0xff] %v299_v23  ;;  %456 = vst [vmem:[%s874_s28 + $0x58] sm:$0xff] %v412_v24 }
  0xfb   : > { %v303_v25 = vpop.f32.mrb[6].mxu0  ;;  %v416_v26 = vpop.f32.mrb[6].mxu1 }
  0xfc   : > { %457 = vst [vmem:[%s874_s28 + $0x60] sm:$0xff] %v303_v25  ;;  %459 = vst [vmem:[%s874_s28 + $0x70] sm:$0xff] %v416_v26  ;;  %v305_v27 = vpop.f32.mrb[7].mxu0  ;;  %v418_v28 = vpop.f32.mrb[7].mxu1 }
  0xfd   : > { %458 = vst [vmem:[%s874_s28 + $0x68] sm:$0xff] %v305_v27  ;;  %460 = vst [vmem:[%s874_s28 + $0x78] sm:$0xff] %v418_v28 }
  0xff   : > { %v309_v29 = vpop.f32.mrb[8].mxu0  ;;  %v422_v30 = vpop.f32.mrb[8].mxu1 }
 0x100   : > { %461 = vst [vmem:[%s874_s28 + $0x80] sm:$0xff] %v309_v29  ;;  %463 = vst [vmem:[%s874_s28 + $0x90] sm:$0xff] %v422_v30  ;;  %v311_v31 = vpop.f32.mrb[9].mxu0  ;;  %v424_v32 = vpop.f32.mrb[9].mxu1 }
 0x101   : > { %462 = vst [vmem:[%s874_s28 + $0x88] sm:$0xff] %v311_v31  ;;  %464 = vst [vmem:[%s874_s28 + $0x98] sm:$0xff] %v424_v32 }
 0x103   : > { %v315_v33 = vpop.f32.mrb[10].mxu0  ;;  %v428_v34 = vpop.f32.mrb[10].mxu1 }
 0x104   : > { %465 = vst [vmem:[%s874_s28 + $0xa0] sm:$0xff] %v315_v33  ;;  %467 = vst [vmem:[%s874_s28 + $0xb0] sm:$0xff] %v428_v34  ;;  %v317_v35 = vpop.f32.mrb[11].mxu0  ;;  %v430_v36 = vpop.f32.mrb[11].mxu1 }
 0x105   : > { %466 = vst [vmem:[%s874_s28 + $0xa8] sm:$0xff] %v317_v35  ;;  %468 = vst [vmem:[%s874_s28 + $0xb8] sm:$0xff] %v430_v36 }
 0x107   : > { %v321_v37 = vpop.f32.mrb[12].mxu0  ;;  %v434_v38 = vpop.f32.mrb[12].mxu1 }
 0x108   : > { %469 = vst [vmem:[%s874_s28 + $0xc0] sm:$0xff] %v321_v37  ;;  %471 = vst [vmem:[%s874_s28 + $0xd0] sm:$0xff] %v434_v38  ;;  %v323_v39 = vpop.f32.mrb[13].mxu0  ;;  %v436_v40 = vpop.f32.mrb[13].mxu1 }
 0x109   : > { %470 = vst [vmem:[%s874_s28 + $0xc8] sm:$0xff] %v323_v39  ;;  %472 = vst [vmem:[%s874_s28 + $0xd8] sm:$0xff] %v436_v40 }
 0x10b   : > { %v327_v41 = vpop.f32.mrb[14].mxu0  ;;  %v440_v42 = vpop.f32.mrb[14].mxu1 }
 0x10c   : > { %473 = vst [vmem:[%s874_s28 + $0xe0] sm:$0xff] %v327_v41  ;;  %475 = vst [vmem:[%s874_s28 + $0xf0] sm:$0xff] %v440_v42  ;;  %v329_v43 = vpop.f32.mrb[15].mxu0  ;;  %v442_v44 = vpop.f32.mrb[15].mxu1 }
 0x10d   : > { %474 = vst [vmem:[%s874_s28 + $0xe8] sm:$0xff] %v329_v43  ;;  %476 = vst [vmem:[%s874_s28 + $0xf8] sm:$0xff] %v442_v44 }
 0x10e   : > { %685 = shalt.err (!%p682_p5)
}
 0x10f   : > { %s686_s16 = scalar_lea.hbm %s909_s5, 4096  ;;  %s690_s23 = scalar_lea.hbm %s967_s2, 8192 }
 0x110   : > { %p687_p6 = scmp.ne.s32.totalorder %s909_s5, %s686_s16  ;;  %p691_p10 = scmp.lt.u32.totalorder %s909_s5, %s967_s2 }
 0x111   : > { %p692_p11 = scmp.lt.u32.totalorder %s690_s23, %s686_s16  ;;  %p694_p13 = scmp.lt.u32.totalorder %s686_s16, %s909_s5 }
 0x112   : > { %p688_p7 = pnand %p687_p6, %p812_p4 }
 0x113   : > { %p693_p12 = por %p692_p11, %p691_p10 }
 0x114   : > { %p689_p9 = pneg %p688_p7 }
 0x115   : > { %p695_p0 = por %p694_p13, %p693_p12 }
 0x117   : > { %p696_p1 = pnand %p695_p0, %p689_p9 }
 0x119   : > { %699 = shalt.err (!%p696_p1)
}
 0x11a   : > { %s754_s26 = smov 512   ;;  %s755_s27 = smov 1024  }
 0x11b   : > { %s756_s28 = smov 32  }
 0x11c   : > { %613 = dma.vmem_to_hbm [thread:$0]  (%p812_p4), %s911_s30, 4096, %s909_s5, %s919_s12, %s754_s26, %s755_s27, %s756_s28  }
 0x11d PF: > { %p619_p2 = scmp.ge.s32.totalorder %s750_s14, 2  ;;  %s509_s29 = sand.u32 1, %s730_s9  }
 0x11e   : > { %s510_s3 = scalar_lea.sflag [#allocation3], %s509_s29 }
 0x11f   : > { %p616_p3 = pnand %p619_p2, %p819_p8 }
 0x121   : > { %725 = dma.done.wait (!%p616_p3), %s510_s3, 4096  }
 0x122   : > { %727 = vsyncadd (!%p616_p3), %s510_s3, 4294963200  ;;  %s15_s14 = sadd.s32 1, %s750_s14   ;;  %s970_s9 = smov %s734_s10 }
 0x123   : > { %p12_p5 = scmp.ge.s32.totalorder %s15_s14, 4   ;;  %s971_s10 = smov %s738_s11 }
 0x124   : > { %s972_s11 = smov %s825_s22  ;;  %s973_s12 = smov %s746_s13 }
 0x125   : > { %s974_s13 = smov %s976_s17  ;;  %14 = sbr.rel (!%p12_p5) target bundleno = 4 (0x4), region = 66 }
 0x12c   :  { %515 = vsyncpa [#allocation3], 1 }
 0x12d   :  { %517 = vsyncpa [#allocation3 + $0x1], 1 }

</bundles_post_ra>
